<compile_context>
chip_gen: v5e
topology: v5e:2x2
jax: 0.10.0
libtpu: 0.0.40
codegen_flags: <defaults>
</compile_context>

<pallas_src>
import functools

import jax
import jax.numpy as jnp
from jax.experimental import pallas as pl
from jax.experimental.pallas import tpu as pltpu

IN_FEATURES = 150
OUT_FEATURES = 5
# Max batch tile: 8192 rows of x (8192 x 256 padded lanes x 4 B = 8 MiB per
# buffer, 16 MiB double-buffered) + ~0.5 MiB transposed output buffers.
MAX_TILE_B = 8192
VMEM_LIMIT_BYTES = 28 << 20


def _round_up(n: int, m: int) -> int:
    return ((n + m - 1) // m) * m


def _choose_tile(batch: int, max_tile_b: int) -> int:
    # Tiny batches: a single grid step with full-extent blocks (no alignment
    # requirement when the block equals the array dims).
    if batch <= 128:
        return batch
    # Otherwise pick a 128-multiple tile (batch is the *lane* axis of the
    # transposed output block) and aim for >= 2 grid steps so the "parallel"
    # batch axis can shard across the 2 TensorCores on v7x.
    tile = _round_up((batch + 1) // 2, 128)
    return min(max_tile_b, tile)


def linear_kernel(x_ref, w_ref, b_ref, o_ref):
    # MXU matmul with f32 accumulation: (tile_b, 150) @ (150, 5) -> (tile_b, 5).
    acc = jnp.dot(x_ref[...], w_ref[...], preferred_element_type=jnp.float32)
    # Lane-dense store: transpose the narrow result so the output block is
    # (5, tile_b) -> unmasked full-lane stores + contiguous writeback DMA.
    acc_t = jnp.transpose(acc)                            # (5, tile_b)
    o_ref[...] = (acc_t + b_ref[...]).astype(o_ref.dtype)  # bias is (5, 1)


@functools.partial(jax.jit, static_argnames=("max_tile_b",))
def linear_forward(x, w, b, *, max_tile_b=MAX_TILE_B):
    """x: (B, 150) f32, w: (150, 5) f32, b: (5,) f32 -> (B, 5) f32."""
    B = x.shape[0]
    tile_b = _choose_tile(B, max_tile_b)
    grid = (pl.cdiv(B, tile_b),)
    b2d = b.reshape(OUT_FEATURES, 1)

    out_t = pl.pallas_call(
        linear_kernel,
        # Output is stored transposed (5, B) so its last dim is lane-dense.
        out_shape=jax.ShapeDtypeStruct((OUT_FEATURES, B), x.dtype),
        grid_spec=pltpu.PrefetchScalarGridSpec(
            num_scalar_prefetch=0,
            grid=grid,
            in_specs=[
                # x: tiled over batch; feature dim is full-extent (150).
                pl.BlockSpec((tile_b, IN_FEATURES), lambda i: (i, 0)),
                # Weight and bias: same block every step -> VMEM-resident.
                pl.BlockSpec((IN_FEATURES, OUT_FEATURES), lambda i: (0, 0)),
                pl.BlockSpec((OUT_FEATURES, 1), lambda i: (0, 0)),
            ],
            out_specs=pl.BlockSpec((OUT_FEATURES, tile_b), lambda i: (0, i)),
        ),
        compiler_params=pltpu.CompilerParams(
            # Independent batch tiles: parallel semantics (TC sharding on v7x).
            dimension_semantics=("parallel",),
            vmem_limit_bytes=VMEM_LIMIT_BYTES,
        ),
        cost_estimate=pl.CostEstimate(
            flops=2 * B * IN_FEATURES * OUT_FEATURES,
            bytes_accessed=4 * (B * IN_FEATURES
                                + IN_FEATURES * OUT_FEATURES
                                + B * OUT_FEATURES),
            transcendentals=0,
        ),
    )(x, w, b2d)
    # Cheap (B x 20 B) transpose back to the PyTorch output layout (B, 5).
    return jnp.transpose(out_t)


if __name__ == "__main__":
    key = jax.random.PRNGKey(0)
    kx, kw, kb, kx2 = jax.random.split(key, 4)

    # Deterministic parameter init mirroring nn.Linear default
    # (uniform in [-1/sqrt(fan_in), 1/sqrt(fan_in)]).
    bound = 1.0 / (IN_FEATURES ** 0.5)
    w = jax.random.uniform(
        kw, (IN_FEATURES, OUT_FEATURES), dtype=jnp.float32,
        minval=-bound, maxval=bound)
    b = jax.random.uniform(
        kb, (OUT_FEATURES,), dtype=jnp.float32, minval=-bound, maxval=bound)

    # Small batch: single grid step, full-extent blocks.
    batch = 8
    x = jax.random.normal(kx, (batch, IN_FEATURES), dtype=jnp.float32)
    out = jax.block_until_ready(linear_forward(x, w, b))
    ref = x @ w + b
    assert out.shape == (batch, OUT_FEATURES)
    assert jnp.allclose(out, ref, atol=1e-5, rtol=1e-5)

    # Larger, non-tile-aligned batch: exercises the multi-step grid, the
    # ragged (masked) last block, and the lane-dense transposed output path.
    batch2 = 300
    x2 = jax.random.normal(kx2, (batch2, IN_FEATURES), dtype=jnp.float32)
    out2 = jax.block_until_ready(linear_forward(x2, w, b))
    ref2 = x2 @ w + b
    assert out2.shape == (batch2, OUT_FEATURES)
    assert jnp.allclose(out2, ref2, atol=1e-5, rtol=1e-5)

    print("KERNEL_OK")
</pallas_src>

<mosaic_0001>
module attributes {stable_mosaic.version = 11 : i64} {
  func.func @linear_kernel(%arg0: i32, %arg1: memref<8x150xf32, #tpu.memory_space<vmem>>, %arg2: memref<150x5xf32, #tpu.memory_space<vmem>>, %arg3: memref<5x1xf32, #tpu.memory_space<vmem>>, %arg4: memref<5x8xf32, #tpu.memory_space<vmem>>) attributes {dimension_semantics = [#tpu.dimension_semantics<parallel>], iteration_bounds = array<i64: 1>, scalar_prefetch = 0 : i64, scratch_operands = 0 : i64, tpu.core_type = #tpu.core_type<tc>, window_params = [{transform_indices = @transform_0, window_bounds = array<i64: 8, 150>}, {pipeline_mode = #tpu.pipeline_mode<synchronous>, transform_indices = @transform_1, window_bounds = array<i64: 150, 5>}, {pipeline_mode = #tpu.pipeline_mode<synchronous>, transform_indices = @transform_2, window_bounds = array<i64: 5, 1>}, {transform_indices = @transform_3, window_bounds = array<i64: 5, 8>}]} {
    %c0 = arith.constant 0 : index
    %c0_0 = arith.constant 0 : index
    %0 = vector.load %arg1[%c0, %c0_0] : memref<8x150xf32, #tpu.memory_space<vmem>>, vector<8x150xf32>
    %c0_1 = arith.constant 0 : index
    %c0_2 = arith.constant 0 : index
    %1 = vector.load %arg2[%c0_1, %c0_2] : memref<150x5xf32, #tpu.memory_space<vmem>>, vector<150x5xf32>
    %cst = arith.constant dense<0.000000e+00> : vector<8x5xf32>
    %2 = tpu.matmul %0, %1, %cst {dimension_numbers = #tpu.dot_dimension_numbers<[1], [0], [0], [1], [0, 0, 1, 1], [], []>} : vector<8x150xf32>, vector<150x5xf32>, vector<8x5xf32> -> vector<8x5xf32>
    %3 = tpu.transpose %2, [1, 0] : vector<8x5xf32> -> vector<5x8xf32>
    %c0_3 = arith.constant 0 : index
    %c0_4 = arith.constant 0 : index
    %4 = vector.load %arg3[%c0_3, %c0_4] : memref<5x1xf32, #tpu.memory_space<vmem>>, vector<5x1xf32>
    %5 = vector.broadcast %4 : vector<5x1xf32> to vector<5x8xf32>
    %6 = arith.addf %3, %5 : vector<5x8xf32>
    %c0_5 = arith.constant 0 : index
    %c0_6 = arith.constant 0 : index
    %7 = vector.load %arg4[%c0_5, %c0_6] : memref<5x8xf32, #tpu.memory_space<vmem>>, vector<5x8xf32>
    tpu.vector_store %arg4[%c0_5, %c0_6], %6 {strides = array<i32>} : memref<5x8xf32, #tpu.memory_space<vmem>>, vector<5x8xf32>,
    return
  }
  func.func @transform_0(%arg0: i32) -> (i32, i32) {
    %c0_i32 = arith.constant 0 : i32
    %c0_i32_0 = arith.constant 0 : i32
    return %arg0, %c0_i32 : i32, i32
  }
  func.func @transform_1(%arg0: i32) -> (i32, i32) {
    %c0_i32 = arith.constant 0 : i32
    %c0_i32_0 = arith.constant 0 : i32
    %c0_i32_1 = arith.constant 0 : i32
    return %c0_i32, %c0_i32_0 : i32, i32
  }
  func.func @transform_2(%arg0: i32) -> (i32, i32) {
    %c0_i32 = arith.constant 0 : i32
    %c0_i32_0 = arith.constant 0 : i32
    %c0_i32_1 = arith.constant 0 : i32
    return %c0_i32, %c0_i32_0 : i32, i32
  }
  func.func @transform_3(%arg0: i32) -> (i32, i32) {
    %c0_i32 = arith.constant 0 : i32
    %c0_i32_0 = arith.constant 0 : i32
    return %c0_i32, %arg0 : i32, i32
  }
}

</mosaic_0001>

<bundles_post_ra>
// kernel: linear_forward.1
= control target key start
LH: loop header
LB: loop body
LE: loop exit
PB: predicated region body
PF: predicated region fallthrough
CT: control target
= control target key end

     0   :  { %v133_v2 = vmov 0   ;;  %vm39_vm0 = vcmask 1045504   ;;  %vm35_vm1 = vcmask 179200   ;;  %vm122_vm2 = vcmask 61440   ;;  %s223_s1 = inlined_call_operand.vmem [shape: f32[150,5], index: 1, kind: input, shape index: {}]   ;;  %s224_s0 = inlined_call_operand.vmem [shape: f32[8,150], index: 0, kind: input, shape index: {}]   ;;  %s225_s2 = inlined_call_operand.vmem [shape: f32[5,1], index: 2, kind: input, shape index: {}]   ;;  %s226_s3 = inlined_call_operand.vmem [shape: f32[5,8], index: 3, kind: output, shape index: {}]  }
   0x1   :  { %v31_v0 = vld [vmem:[%s223_s1 + $0x78] sm:$0xff]  ;;  %v30_v1 = vld [vmem:[%s223_s1 + $0x70] sm:$0xff]  ;;  %132 = vset.pattern.permute.xlu0 %v133_v2  ;;  %v29_v3 = vld [vmem:[%s223_s1 + $0x68] sm:$0xff] }
   0x2   :  { %43 = vmatpush.msra.mxu0 %v31_v0  ;;  %v28_v4 = vld [vmem:[%s223_s1 + $0x60] sm:$0xff]  ;;  %v34_v5 = vld [vmem:[%s223_s1 + $0x90] sm:$0x3f]  ;;  %v33_v6 = vld [vmem:[%s223_s1 + $0x88] sm:$0xff] }
   0x3   :  { %128 = vmatpush.msk.msra.mxu1 %vm39_vm0, %v34_v5  ;;  %v27_v7 = vld [vmem:[%s223_s1 + $0x58] sm:$0xff]  ;;  %v32_v8 = vld [vmem:[%s223_s1 + $0x80] sm:$0xff]  ;;  %v15_v9 = vld [vmem:[%s224_s0 + $0x8] sm:$0xff] }
   0x4   :  { %44 = vmatpush.msra.mxu0 %v30_v1  ;;  %v115_v10 = vld [vmem:[%s225_s2] sm:$0x1f]  ;;  %v26_v11 = vld [vmem:[%s223_s1 + $0x50] sm:$0xff]  ;;  %v25_v12 = vld [vmem:[%s223_s1 + $0x48] sm:$0xff] }
   0x5   :  { %77 = vmatpush.msra.mxu1 %v33_v6  ;;  %118 = vperm.xlu0 %132, %v115_v10   ;;  %v24_v13 = vld [vmem:[%s223_s1 + $0x40] sm:$0xff]  ;;  %v23_v14 = vld [vmem:[%s223_s1 + $0x38] sm:$0xff]  ;;  %v22_v15 = vld [vmem:[%s223_s1 + $0x30] sm:$0xff] }
   0x6   :  { %45 = vmatpush.msra.mxu0 %v29_v3  ;;  %v21_v16 = vld [vmem:[%s223_s1 + $0x28] sm:$0xff]  ;;  %v20_v17 = vld [vmem:[%s223_s1 + $0x20] sm:$0xff]  ;;  %v19_v18 = vld [vmem:[%s223_s1 + $0x18] sm:$0xff] }
   0x7   :  { %78 = vmatpush.msra.mxu1 %v32_v8  ;;  %v18_v19 = vld [vmem:[%s223_s1 + $0x10] sm:$0xff]  ;;  %v17_v20 = vld [vmem:[%s223_s1 + $0x8] sm:$0xff]  ;;  %v16_v21 = vld [vmem:[%s223_s1] sm:$0xff] }
   0x8   :  { %46 = vmatpush.msra.mxu0 %v28_v4  ;;  %129 = vmatmul.msk.f32.vlgmr.msra.gmra.mxu1 %vm35_vm1, %v15_v9  ;;  %v14_v22 = vld [vmem:[%s224_s0] sm:$0xff] }
   0xa   :  { %47 = vmatpush.msra.mxu0 %v27_v7 }
   0xc   :  { %48 = vmatpush.msra.mxu0 %v26_v11 }
   0xe   :  { %49 = vmatpush.msra.mxu0 %v25_v12 }
  0x10   :  { %50 = vmatpush.msra.mxu0 %v24_v13 }
  0x12   :  { %51 = vmatpush.msra.mxu0 %v23_v14 }
  0x14   :  { %52 = vmatpush.msra.mxu0 %v22_v15 }
  0x16   :  { %53 = vmatpush.msra.mxu0 %v21_v16 }
  0x18   :  { %54 = vmatpush.msra.mxu0 %v20_v17 }
  0x1a   :  { %55 = vmatpush.msra.mxu0 %v19_v18 }
  0x1c   :  { %56 = vmatpush.msra.mxu0 %v18_v19 }
  0x1e   :  { %57 = vmatpush.msra.mxu0 %v17_v20 }
  0x20   :  { %58 = vmatpush.msra.mxu0 %v16_v21 }
  0x21   :  { %59 = vmatmul.f32.vlgmr.msra.gmra.mxu0 %v14_v22 }
  0x77   :  { %v119_v26 = vpop.permute.xlu0 %118 }
  0x85   :  { %v80_v23 = vpop.f32.mrf.mxu1 }
  0x9e   :  { %v60_v24 = vpop.f32.mrf.mxu0 }
  0x9f   :  { %v81_v25 = vadd.f32 %v80_v23, %v60_v24 }
  0xa1   :  { %83 = vxpose.xlu0.b32.start.end [1/1] (short) (narrow) %v81_v25, 8 }
 0x145   :  { %v99_v27 = vpop.trf.xlu0 }
 0x146   :  { %v121_v28 = vadd.f32 %v119_v26, %v99_v27 }
 0x148   :  { %123 = vst.msk [vmem:[%s226_s3] sm:$0x1f] %vm122_vm2, %v121_v28 }

</bundles_post_ra>
